<compile_context>
chip_gen: v6e
topology: v6e:2x2x1
jax: 0.10.0
libtpu: 0.0.40
codegen_flags: <defaults>
</compile_context>

<pallas_src>
import functools

import jax
import jax.numpy as jnp
from jax import lax
from jax.experimental import pallas as pl
from jax.experimental.pallas import tpu as pltpu

K = 4          # conv kernel size
STRIDE = 2
PAD = 1
EPS = 1e-5     # InstanceNorm2d default eps
NEG_SLOPE = 0.2


def _round_up(a, b):
    return (a + b - 1) // b * b


def _conv_tile(xs_ref, w_ref, q0, wp, cout_p, q_tile):
    """Accumulate the 16 conv taps for one Q tile -> (cout_p, q_tile) f32.

    xs_ref: (4, cin_p, qin)  pixel-unshuffled padded input (4 stride-2 subgrids,
            flattened extended spatial axis in lanes).
    w_ref:  (16, cout_p, cin_p) per-tap weights.
    """
    acc = jnp.zeros((cout_p, q_tile), jnp.float32)
    for kh in range(K):
        for kw in range(K):
            g = (kh % 2) * 2 + (kw % 2)        # which stride-2 subgrid
            off = (kh // 2) * wp + (kw // 2)   # static lane offset within subgrid
            xt = xs_ref[g, :, pl.ds(q0 + off, q_tile)]   # (cin_p, q_tile)
            wt = w_ref[kh * K + kw]                       # (cout_p, cin_p)
            acc = acc + jnp.dot(wt, xt, preferred_element_type=jnp.float32)
    return acc


@functools.partial(jax.jit, static_argnames=("compute_dtype", "q_tile_cap"))
def unet_down(x, weight, compute_dtype=jnp.bfloat16, q_tile_cap=2048):
    """x: (N, Cin, H, W) f32, weight: (Cout, Cin, 4, 4) f32 -> (N, Cout, H//2, W//2)."""
    n, cin, h, w = x.shape
    cout = weight.shape[0]
    ho, wo = h // STRIDE, w // STRIDE
    hp, wp = ho + 1, wo + 1
    p_count = ho * wo            # valid spatial positions per image
    qv = ho * wp                 # extended positions (valid + 1 garbage col/row)

    cin_p = _round_up(cin, 8)
    cout_p = _round_up(cout, 8)

    # Lane tile for the extended spatial axis: >=128, <=q_tile_cap, and keep
    # the f32 conv accumulator (cout_p x q_tile) around <=2 MiB so the
    # per-step VMEM footprint stays modest even for wide layers.
    ch_cap = max(128, ((2 * 1024 * 1024) // (4 * cout_p)) // 128 * 128)
    q_tile = max(128, min(_round_up(min(qv, q_tile_cap), 128), ch_cap))
    num_q = pl.cdiv(qv, q_tile)
    qout = num_q * q_tile
    qin = _round_up(qout + wp + 1, 128)

    # --- host-side data prep (~1x input bytes, no im2col blow-up) -----------
    x_pad = jnp.pad(x, ((0, 0), (0, 0), (PAD, PAD), (PAD, PAD)))
    xs = x_pad.reshape(n, cin, hp, 2, wp, 2)
    xs = xs.transpose(0, 3, 5, 1, 2, 4)            # (n, a, b, cin, hp, wp)
    xs = xs.reshape(n, 4, cin, hp * wp)
    xs = jnp.pad(xs, ((0, 0), (0, 0), (0, cin_p - cin), (0, qin - hp * wp)))
    xs = xs.astype(compute_dtype)

    w_taps = weight.transpose(2, 3, 0, 1).reshape(K * K, cout, cin)
    w_taps = jnp.pad(w_taps, ((0, 0), (0, cout_p - cout), (0, cin_p - cin)))
    w_taps = w_taps.astype(compute_dtype)

    # validity mask over the extended spatial axis (1.0 = real output position)
    qs = jnp.arange(qout, dtype=jnp.int32)
    mask = (((qs % wp) < wo) & (qs < qv)).astype(jnp.float32).reshape(1, qout)

    inv_count = 1.0 / float(p_count)

    if num_q == 1:
        # ---- fully fused single pass: conv + stats + norm + LeakyReLU -------
        def fused_kernel(xs_ref, w_ref, m_ref, o_ref):
            y = _conv_tile(xs_ref, w_ref, 0, wp, cout_p, q_tile)
            ym = y * m_ref[...]                          # zero garbage columns
            s1 = jnp.sum(ym, axis=1, keepdims=True)
            s2 = jnp.sum(ym * ym, axis=1, keepdims=True)
            mean = s1 * inv_count
            var = jnp.maximum(s2 * inv_count - mean * mean, 0.0)
            scale = lax.rsqrt(var + EPS)
            yn = (y - mean) * scale
            o_ref[...] = jnp.where(yn >= 0, yn, NEG_SLOPE * yn)

        z = pl.pallas_call(
            fused_kernel,
            out_shape=jax.ShapeDtypeStruct((n, cout_p, qout), jnp.float32),
            grid=(n,),
            in_specs=[
                pl.BlockSpec((None, 4, cin_p, qin), lambda bi: (bi, 0, 0, 0)),
                pl.BlockSpec((K * K, cout_p, cin_p), lambda bi: (0, 0, 0)),
                pl.BlockSpec((1, qout), lambda bi: (0, 0)),
            ],
            out_specs=pl.BlockSpec((None, cout_p, qout), lambda bi: (bi, 0, 0)),
            compiler_params=pltpu.CompilerParams(
                dimension_semantics=("parallel",),
                vmem_limit_bytes=32 * 1024 * 1024),
        )(xs, w_taps, mask)
    else:
        # ---- pass 1: conv (once) + per-channel masked sum / sum-of-squares --
        xs_spec = pl.BlockSpec((None, 4, cin_p, qin), lambda bi, qi: (bi, 0, 0, 0))
        w_spec = pl.BlockSpec((K * K, cout_p, cin_p), lambda bi, qi: (0, 0, 0))
        mask_spec = pl.BlockSpec((1, q_tile), lambda bi, qi: (0, qi))
        vec_spec = pl.BlockSpec((None, cout_p, 1), lambda bi, qi: (bi, 0, 0))
        y_spec = pl.BlockSpec((None, cout_p, q_tile), lambda bi, qi: (bi, 0, qi))

        def conv_stats_kernel(xs_ref, w_ref, m_ref, y_ref, s1_ref, s2_ref):
            q_i = pl.program_id(1)

            @pl.when(q_i == 0)
            def _():
                s1_ref[...] = jnp.zeros_like(s1_ref)
                s2_ref[...] = jnp.zeros_like(s2_ref)

            q0 = pl.multiple_of(q_i * q_tile, q_tile)
            y = _conv_tile(xs_ref, w_ref, q0, wp, cout_p, q_tile)
            y_ref[...] = y
            ym = y * m_ref[...]                          # zero garbage columns
            s1_ref[...] += jnp.sum(ym, axis=1, keepdims=True)
            s2_ref[...] += jnp.sum(ym * ym, axis=1, keepdims=True)

        y_full, sums, sqs = pl.pallas_call(
            conv_stats_kernel,
            out_shape=(jax.ShapeDtypeStruct((n, cout_p, qout), jnp.float32),
                       jax.ShapeDtypeStruct((n, cout_p, 1), jnp.float32),
                       jax.ShapeDtypeStruct((n, cout_p, 1), jnp.float32)),
            grid=(n, num_q),
            in_specs=[xs_spec, w_spec, mask_spec],
            out_specs=(y_spec, vec_spec, vec_spec),
            compiler_params=pltpu.CompilerParams(
                dimension_semantics=("parallel", "arbitrary"),
                vmem_limit_bytes=32 * 1024 * 1024),
        )(xs, w_taps, mask)

        # tiny glue: InstanceNorm stats -> per-channel scale / shift (all f32)
        mean = sums[..., 0] * inv_count                  # (n, cout_p)
        var = jnp.maximum(sqs[..., 0] * inv_count - mean * mean, 0.0)
        scale = lax.rsqrt(var + EPS)
        shift = -mean * scale
        scale = scale.reshape(n, cout_p, 1)
        shift = shift.reshape(n, cout_p, 1)

        # ---- pass 2: purely elementwise normalize + LeakyReLU ---------------
        # Wider lane tiles (no halo / accumulator constraints here); the conv
        # output buffer is aliased for the final output (in-place update).
        q_tile2 = q_tile
        while (q_tile2 * 2 <= qout and qout % (q_tile2 * 2) == 0
               and cout_p * (q_tile2 * 2) * 4 <= 4 * 1024 * 1024):
            q_tile2 *= 2
        num_q2 = qout // q_tile2

        tile2_spec = pl.BlockSpec((None, cout_p, q_tile2), lambda bi, qi: (bi, 0, qi))
        vec2_spec = pl.BlockSpec((None, cout_p, 1), lambda bi, qi: (bi, 0, 0))

        def norm_act_kernel(y_ref, a_ref, b_ref, o_ref):
            y = y_ref[...] * a_ref[...] + b_ref[...]
            o_ref[...] = jnp.where(y >= 0, y, NEG_SLOPE * y)

        z = pl.pallas_call(
            norm_act_kernel,
            out_shape=jax.ShapeDtypeStruct((n, cout_p, qout), jnp.float32),
            grid=(n, num_q2),
            in_specs=[tile2_spec, vec2_spec, vec2_spec],
            out_specs=tile2_spec,
            input_output_aliases={0: 0},
            compiler_params=pltpu.CompilerParams(
                dimension_semantics=("parallel", "parallel"),
                vmem_limit_bytes=32 * 1024 * 1024),
        )(y_full, scale, shift)

    # (n, cout_p, qout) -> NCHW: drop channel / garbage-column padding.
    # No transpose needed since channels are already the leading axis.
    out = z[:, :cout, :qv].reshape(n, cout, ho, wp)[:, :, :, :wo]
    return out


def _reference(x, weight):
    """Plain-JAX reference (f32) for validation."""
    y = lax.conv_general_dilated(
        x, weight,
        window_strides=(STRIDE, STRIDE),
        padding=((PAD, PAD), (PAD, PAD)),
        dimension_numbers=("NCHW", "OIHW", "NCHW"))
    mean = jnp.mean(y, axis=(2, 3), keepdims=True)
    var = jnp.mean((y - mean) ** 2, axis=(2, 3), keepdims=True)
    y_hat = (y - mean) / jnp.sqrt(var + EPS)
    return jnp.where(y_hat >= 0, y_hat, NEG_SLOPE * y_hat)


if __name__ == "__main__":
    key = jax.random.PRNGKey(0)
    k_x, k_w = jax.random.split(key)

    # --- main test shape: exercises the fused single-pass path ---------------
    N, C_IN, C_OUT, H, W = 2, 4, 8, 16, 16
    x = jax.random.normal(k_x, (N, C_IN, H, W), dtype=jnp.float32)
    weight = jax.random.normal(k_w, (C_OUT, C_IN, K, K), dtype=jnp.float32) * 0.1

    ref = jax.block_until_ready(_reference(x, weight))

    # f32 compute path: strict semantics check against the reference.
    out_f32 = jax.block_until_ready(unet_down(x, weight, compute_dtype=jnp.float32))
    assert out_f32.shape == (N, C_OUT, H // 2, W // 2), out_f32.shape
    assert jnp.allclose(out_f32, ref, atol=1e-3, rtol=1e-3), \
        float(jnp.max(jnp.abs(out_f32 - ref)))

    # bf16 matmul path (default; MXU-native on v6e/v7x): looser tolerance.
    out_bf16 = jax.block_until_ready(unet_down(x, weight))
    assert out_bf16.shape == (N, C_OUT, H // 2, W // 2), out_bf16.shape
    assert jnp.allclose(out_bf16, ref, atol=5e-2, rtol=5e-2), \
        float(jnp.max(jnp.abs(out_bf16 - ref)))

    # --- second shape with a small forced lane tile: exercises the tiled
    #     two-pass (conv+stats / elementwise) path used for large spatial.
    H2 = W2 = 32
    x2 = jax.random.normal(k_x, (N, C_IN, H2, W2), dtype=jnp.float32)
    ref2 = jax.block_until_ready(_reference(x2, weight))
    out2 = jax.block_until_ready(
        unet_down(x2, weight, compute_dtype=jnp.float32, q_tile_cap=128))
    assert out2.shape == (N, C_OUT, H2 // 2, W2 // 2), out2.shape
    assert jnp.allclose(out2, ref2, atol=1e-3, rtol=1e-3), \
        float(jnp.max(jnp.abs(out2 - ref2)))

    print("KERNEL_OK")
</pallas_src>

<mosaic_0001>
module attributes {stable_mosaic.version = 11 : i64} {
  func.func @fused_kernel(%arg0: i32, %arg1: memref<1x4x8x256xf32, #tpu.memory_space<vmem>>, %arg2: memref<16x8x8xf32, #tpu.memory_space<vmem>>, %arg3: memref<1x128xf32, #tpu.memory_space<vmem>>, %arg4: memref<1x8x128xf32, #tpu.memory_space<vmem>>) attributes {dimension_semantics = [#tpu.dimension_semantics<parallel>], iteration_bounds = array<i64: 2>, scalar_prefetch = 0 : i64, scratch_operands = 0 : i64, tpu.core_type = #tpu.core_type<tc>, window_params = [{transform_indices = @transform_0, window_bounds = array<i64: 1, 4, 8, 256>}, {pipeline_mode = #tpu.pipeline_mode<synchronous>, transform_indices = @transform_1, window_bounds = array<i64: 16, 8, 8>}, {pipeline_mode = #tpu.pipeline_mode<synchronous>, transform_indices = @transform_2, window_bounds = array<i64: 1, 128>}, {transform_indices = @transform_3, window_bounds = array<i64: 1, 8, 128>}]} {
    %cst = arith.constant 0.000000e+00 : f32
    %0 = vector.broadcast %cst : f32 to vector<8x128xf32>
    %c0 = arith.constant 0 : index
    %c0_0 = arith.constant 0 : index
    %c0_1 = arith.constant 0 : index
    %c0_2 = arith.constant 0 : index
    %1 = vector.load %arg1[%c0, %c0_0, %c0_1, %c0_2] : memref<1x4x8x256xf32, #tpu.memory_space<vmem>>, vector<1x1x8x128xf32>
    %2 = vector.shape_cast %1 : vector<1x1x8x128xf32> to vector<8x128xf32>
    %c0_3 = arith.constant 0 : index
    %c0_4 = arith.constant 0 : index
    %c0_5 = arith.constant 0 : index
    %3 = vector.load %arg2[%c0_3, %c0_4, %c0_5] : memref<16x8x8xf32, #tpu.memory_space<vmem>>, vector<1x8x8xf32>
    %4 = vector.shape_cast %3 : vector<1x8x8xf32> to vector<8x8xf32>
    %cst_6 = arith.constant dense<0.000000e+00> : vector<8x128xf32>
    %5 = tpu.matmul %4, %2, %cst_6 {dimension_numbers = #tpu.dot_dimension_numbers<[1], [0], [0], [1], [0, 0, 1, 1], [], []>} : vector<8x8xf32>, vector<8x128xf32>, vector<8x128xf32> -> vector<8x128xf32>
    %6 = arith.addf %0, %5 : vector<8x128xf32>
    %c0_7 = arith.constant 0 : index
    %c1 = arith.constant 1 : index
    %c0_8 = arith.constant 0 : index
    %c0_9 = arith.constant 0 : index
    %7 = vector.load %arg1[%c0_7, %c1, %c0_8, %c0_9] : memref<1x4x8x256xf32, #tpu.memory_space<vmem>>, vector<1x1x8x128xf32>
    %8 = vector.shape_cast %7 : vector<1x1x8x128xf32> to vector<8x128xf32>
    %c1_10 = arith.constant 1 : index
    %c0_11 = arith.constant 0 : index
    %c0_12 = arith.constant 0 : index
    %9 = vector.load %arg2[%c1_10, %c0_11, %c0_12] : memref<16x8x8xf32, #tpu.memory_space<vmem>>, vector<1x8x8xf32>
    %10 = vector.shape_cast %9 : vector<1x8x8xf32> to vector<8x8xf32>
    %cst_13 = arith.constant dense<0.000000e+00> : vector<8x128xf32>
    %11 = tpu.matmul %10, %8, %cst_13 {dimension_numbers = #tpu.dot_dimension_numbers<[1], [0], [0], [1], [0, 0, 1, 1], [], []>} : vector<8x8xf32>, vector<8x128xf32>, vector<8x128xf32> -> vector<8x128xf32>
    %12 = arith.addf %6, %11 : vector<8x128xf32>
    %c0_14 = arith.constant 0 : index
    %c0_15 = arith.constant 0 : index
    %c0_16 = arith.constant 0 : index
    %c1_17 = arith.constant 1 : index
    %13 = vector.load %arg1[%c0_14, %c0_15, %c0_16, %c1_17] : memref<1x4x8x256xf32, #tpu.memory_space<vmem>>, vector<1x1x8x128xf32>
    %14 = vector.shape_cast %13 : vector<1x1x8x128xf32> to vector<8x128xf32>
    %c2 = arith.constant 2 : index
    %c0_18 = arith.constant 0 : index
    %c0_19 = arith.constant 0 : index
    %15 = vector.load %arg2[%c2, %c0_18, %c0_19] : memref<16x8x8xf32, #tpu.memory_space<vmem>>, vector<1x8x8xf32>
    %16 = vector.shape_cast %15 : vector<1x8x8xf32> to vector<8x8xf32>
    %cst_20 = arith.constant dense<0.000000e+00> : vector<8x128xf32>
    %17 = tpu.matmul %16, %14, %cst_20 {dimension_numbers = #tpu.dot_dimension_numbers<[1], [0], [0], [1], [0, 0, 1, 1], [], []>} : vector<8x8xf32>, vector<8x128xf32>, vector<8x128xf32> -> vector<8x128xf32>
    %18 = arith.addf %12, %17 : vector<8x128xf32>
    %c0_21 = arith.constant 0 : index
    %c1_22 = arith.constant 1 : index
    %c0_23 = arith.constant 0 : index
    %c1_24 = arith.constant 1 : index
    %19 = vector.load %arg1[%c0_21, %c1_22, %c0_23, %c1_24] : memref<1x4x8x256xf32, #tpu.memory_space<vmem>>, vector<1x1x8x128xf32>
    %20 = vector.shape_cast %19 : vector<1x1x8x128xf32> to vector<8x128xf32>
    %c3 = arith.constant 3 : index
    %c0_25 = arith.constant 0 : index
    %c0_26 = arith.constant 0 : index
    %21 = vector.load %arg2[%c3, %c0_25, %c0_26] : memref<16x8x8xf32, #tpu.memory_space<vmem>>, vector<1x8x8xf32>
    %22 = vector.shape_cast %21 : vector<1x8x8xf32> to vector<8x8xf32>
    %cst_27 = arith.constant dense<0.000000e+00> : vector<8x128xf32>
    %23 = tpu.matmul %22, %20, %cst_27 {dimension_numbers = #tpu.dot_dimension_numbers<[1], [0], [0], [1], [0, 0, 1, 1], [], []>} : vector<8x8xf32>, vector<8x128xf32>, vector<8x128xf32> -> vector<8x128xf32>
    %24 = arith.addf %18, %23 : vector<8x128xf32>
    %c0_28 = arith.constant 0 : index
    %c2_29 = arith.constant 2 : index
    %c0_30 = arith.constant 0 : index
    %c0_31 = arith.constant 0 : index
    %25 = vector.load %arg1[%c0_28, %c2_29, %c0_30, %c0_31] : memref<1x4x8x256xf32, #tpu.memory_space<vmem>>, vector<1x1x8x128xf32>
    %26 = vector.shape_cast %25 : vector<1x1x8x128xf32> to vector<8x128xf32>
    %c4 = arith.constant 4 : index
    %c0_32 = arith.constant 0 : index
    %c0_33 = arith.constant 0 : index
    %27 = vector.load %arg2[%c4, %c0_32, %c0_33] : memref<16x8x8xf32, #tpu.memory_space<vmem>>, vector<1x8x8xf32>
    %28 = vector.shape_cast %27 : vector<1x8x8xf32> to vector<8x8xf32>
    %cst_34 = arith.constant dense<0.000000e+00> : vector<8x128xf32>
    %29 = tpu.matmul %28, %26, %cst_34 {dimension_numbers = #tpu.dot_dimension_numbers<[1], [0], [0], [1], [0, 0, 1, 1], [], []>} : vector<8x8xf32>, vector<8x128xf32>, vector<8x128xf32> -> vector<8x128xf32>
    %30 = arith.addf %24, %29 : vector<8x128xf32>
    %c0_35 = arith.constant 0 : index
    %c3_36 = arith.constant 3 : index
    %c0_37 = arith.constant 0 : index
    %c0_38 = arith.constant 0 : index
    %31 = vector.load %arg1[%c0_35, %c3_36, %c0_37, %c0_38] : memref<1x4x8x256xf32, #tpu.memory_space<vmem>>, vector<1x1x8x128xf32>
    %32 = vector.shape_cast %31 : vector<1x1x8x128xf32> to vector<8x128xf32>
    %c5 = arith.constant 5 : index
    %c0_39 = arith.constant 0 : index
    %c0_40 = arith.constant 0 : index
    %33 = vector.load %arg2[%c5, %c0_39, %c0_40] : memref<16x8x8xf32, #tpu.memory_space<vmem>>, vector<1x8x8xf32>
    %34 = vector.shape_cast %33 : vector<1x8x8xf32> to vector<8x8xf32>
    %cst_41 = arith.constant dense<0.000000e+00> : vector<8x128xf32>
    %35 = tpu.matmul %34, %32, %cst_41 {dimension_numbers = #tpu.dot_dimension_numbers<[1], [0], [0], [1], [0, 0, 1, 1], [], []>} : vector<8x8xf32>, vector<8x128xf32>, vector<8x128xf32> -> vector<8x128xf32>
    %36 = arith.addf %30, %35 : vector<8x128xf32>
    %c0_42 = arith.constant 0 : index
    %c2_43 = arith.constant 2 : index
    %c0_44 = arith.constant 0 : index
    %c1_45 = arith.constant 1 : index
    %37 = vector.load %arg1[%c0_42, %c2_43, %c0_44, %c1_45] : memref<1x4x8x256xf32, #tpu.memory_space<vmem>>, vector<1x1x8x128xf32>
    %38 = vector.shape_cast %37 : vector<1x1x8x128xf32> to vector<8x128xf32>
    %c6 = arith.constant 6 : index
    %c0_46 = arith.constant 0 : index
    %c0_47 = arith.constant 0 : index
    %39 = vector.load %arg2[%c6, %c0_46, %c0_47] : memref<16x8x8xf32, #tpu.memory_space<vmem>>, vector<1x8x8xf32>
    %40 = vector.shape_cast %39 : vector<1x8x8xf32> to vector<8x8xf32>
    %cst_48 = arith.constant dense<0.000000e+00> : vector<8x128xf32>
    %41 = tpu.matmul %40, %38, %cst_48 {dimension_numbers = #tpu.dot_dimension_numbers<[1], [0], [0], [1], [0, 0, 1, 1], [], []>} : vector<8x8xf32>, vector<8x128xf32>, vector<8x128xf32> -> vector<8x128xf32>
    %42 = arith.addf %36, %41 : vector<8x128xf32>
    %c0_49 = arith.constant 0 : index
    %c3_50 = arith.constant 3 : index
    %c0_51 = arith.constant 0 : index
    %c1_52 = arith.constant 1 : index
    %43 = vector.load %arg1[%c0_49, %c3_50, %c0_51, %c1_52] : memref<1x4x8x256xf32, #tpu.memory_space<vmem>>, vector<1x1x8x128xf32>
    %44 = vector.shape_cast %43 : vector<1x1x8x128xf32> to vector<8x128xf32>
    %c7 = arith.constant 7 : index
    %c0_53 = arith.constant 0 : index
    %c0_54 = arith.constant 0 : index
    %45 = vector.load %arg2[%c7, %c0_53, %c0_54] : memref<16x8x8xf32, #tpu.memory_space<vmem>>, vector<1x8x8xf32>
    %46 = vector.shape_cast %45 : vector<1x8x8xf32> to vector<8x8xf32>
    %cst_55 = arith.constant dense<0.000000e+00> : vector<8x128xf32>
    %47 = tpu.matmul %46, %44, %cst_55 {dimension_numbers = #tpu.dot_dimension_numbers<[1], [0], [0], [1], [0, 0, 1, 1], [], []>} : vector<8x8xf32>, vector<8x128xf32>, vector<8x128xf32> -> vector<8x128xf32>
    %48 = arith.addf %42, %47 : vector<8x128xf32>
    %c0_56 = arith.constant 0 : index
    %c0_57 = arith.constant 0 : index
    %c0_58 = arith.constant 0 : index
    %c9 = arith.constant 9 : index
    %49 = vector.load %arg1[%c0_56, %c0_57, %c0_58, %c9] : memref<1x4x8x256xf32, #tpu.memory_space<vmem>>, vector<1x1x8x128xf32>
    %50 = vector.shape_cast %49 : vector<1x1x8x128xf32> to vector<8x128xf32>
    %c8 = arith.constant 8 : index
    %c0_59 = arith.constant 0 : index
    %c0_60 = arith.constant 0 : index
    %51 = vector.load %arg2[%c8, %c0_59, %c0_60] : memref<16x8x8xf32, #tpu.memory_space<vmem>>, vector<1x8x8xf32>
    %52 = vector.shape_cast %51 : vector<1x8x8xf32> to vector<8x8xf32>
    %cst_61 = arith.constant dense<0.000000e+00> : vector<8x128xf32>
    %53 = tpu.matmul %52, %50, %cst_61 {dimension_numbers = #tpu.dot_dimension_numbers<[1], [0], [0], [1], [0, 0, 1, 1], [], []>} : vector<8x8xf32>, vector<8x128xf32>, vector<8x128xf32> -> vector<8x128xf32>
    %54 = arith.addf %48, %53 : vector<8x128xf32>
    %c0_62 = arith.constant 0 : index
    %c1_63 = arith.constant 1 : index
    %c0_64 = arith.constant 0 : index
    %c9_65 = arith.constant 9 : index
    %55 = vector.load %arg1[%c0_62, %c1_63, %c0_64, %c9_65] : memref<1x4x8x256xf32, #tpu.memory_space<vmem>>, vector<1x1x8x128xf32>
    %56 = vector.shape_cast %55 : vector<1x1x8x128xf32> to vector<8x128xf32>
    %c9_66 = arith.constant 9 : index
    %c0_67 = arith.constant 0 : index
    %c0_68 = arith.constant 0 : index
    %57 = vector.load %arg2[%c9_66, %c0_67, %c0_68] : memref<16x8x8xf32, #tpu.memory_space<vmem>>, vector<1x8x8xf32>
    %58 = vector.shape_cast %57 : vector<1x8x8xf32> to vector<8x8xf32>
    %cst_69 = arith.constant dense<0.000000e+00> : vector<8x128xf32>
    %59 = tpu.matmul %58, %56, %cst_69 {dimension_numbers = #tpu.dot_dimension_numbers<[1], [0], [0], [1], [0, 0, 1, 1], [], []>} : vector<8x8xf32>, vector<8x128xf32>, vector<8x128xf32> -> vector<8x128xf32>
    %60 = arith.addf %54, %59 : vector<8x128xf32>
    %c0_70 = arith.constant 0 : index
    %c0_71 = arith.constant 0 : index
    %c0_72 = arith.constant 0 : index
    %c10 = arith.constant 10 : index
    %61 = vector.load %arg1[%c0_70, %c0_71, %c0_72, %c10] : memref<1x4x8x256xf32, #tpu.memory_space<vmem>>, vector<1x1x8x128xf32>
    %62 = vector.shape_cast %61 : vector<1x1x8x128xf32> to vector<8x128xf32>
    %c10_73 = arith.constant 10 : index
    %c0_74 = arith.constant 0 : index
    %c0_75 = arith.constant 0 : index
    %63 = vector.load %arg2[%c10_73, %c0_74, %c0_75] : memref<16x8x8xf32, #tpu.memory_space<vmem>>, vector<1x8x8xf32>
    %64 = vector.shape_cast %63 : vector<1x8x8xf32> to vector<8x8xf32>
    %cst_76 = arith.constant dense<0.000000e+00> : vector<8x128xf32>
    %65 = tpu.matmul %64, %62, %cst_76 {dimension_numbers = #tpu.dot_dimension_numbers<[1], [0], [0], [1], [0, 0, 1, 1], [], []>} : vector<8x8xf32>, vector<8x128xf32>, vector<8x128xf32> -> vector<8x128xf32>
    %66 = arith.addf %60, %65 : vector<8x128xf32>
    %c0_77 = arith.constant 0 : index
    %c1_78 = arith.constant 1 : index
    %c0_79 = arith.constant 0 : index
    %c10_80 = arith.constant 10 : index
    %67 = vector.load %arg1[%c0_77, %c1_78, %c0_79, %c10_80] : memref<1x4x8x256xf32, #tpu.memory_space<vmem>>, vector<1x1x8x128xf32>
    %68 = vector.shape_cast %67 : vector<1x1x8x128xf32> to vector<8x128xf32>
    %c11 = arith.constant 11 : index
    %c0_81 = arith.constant 0 : index
    %c0_82 = arith.constant 0 : index
    %69 = vector.load %arg2[%c11, %c0_81, %c0_82] : memref<16x8x8xf32, #tpu.memory_space<vmem>>, vector<1x8x8xf32>
    %70 = vector.shape_cast %69 : vector<1x8x8xf32> to vector<8x8xf32>
    %cst_83 = arith.constant dense<0.000000e+00> : vector<8x128xf32>
    %71 = tpu.matmul %70, %68, %cst_83 {dimension_numbers = #tpu.dot_dimension_numbers<[1], [0], [0], [1], [0, 0, 1, 1], [], []>} : vector<8x8xf32>, vector<8x128xf32>, vector<8x128xf32> -> vector<8x128xf32>
    %72 = arith.addf %66, %71 : vector<8x128xf32>
    %c0_84 = arith.constant 0 : index
    %c2_85 = arith.constant 2 : index
    %c0_86 = arith.constant 0 : index
    %c9_87 = arith.constant 9 : index
    %73 = vector.load %arg1[%c0_84, %c2_85, %c0_86, %c9_87] : memref<1x4x8x256xf32, #tpu.memory_space<vmem>>, vector<1x1x8x128xf32>
    %74 = vector.shape_cast %73 : vector<1x1x8x128xf32> to vector<8x128xf32>
    %c12 = arith.constant 12 : index
    %c0_88 = arith.constant 0 : index
    %c0_89 = arith.constant 0 : index
    %75 = vector.load %arg2[%c12, %c0_88, %c0_89] : memref<16x8x8xf32, #tpu.memory_space<vmem>>, vector<1x8x8xf32>
    %76 = vector.shape_cast %75 : vector<1x8x8xf32> to vector<8x8xf32>
    %cst_90 = arith.constant dense<0.000000e+00> : vector<8x128xf32>
    %77 = tpu.matmul %76, %74, %cst_90 {dimension_numbers = #tpu.dot_dimension_numbers<[1], [0], [0], [1], [0, 0, 1, 1], [], []>} : vector<8x8xf32>, vector<8x128xf32>, vector<8x128xf32> -> vector<8x128xf32>
    %78 = arith.addf %72, %77 : vector<8x128xf32>
    %c0_91 = arith.constant 0 : index
    %c3_92 = arith.constant 3 : index
    %c0_93 = arith.constant 0 : index
    %c9_94 = arith.constant 9 : index
    %79 = vector.load %arg1[%c0_91, %c3_92, %c0_93, %c9_94] : memref<1x4x8x256xf32, #tpu.memory_space<vmem>>, vector<1x1x8x128xf32>
    %80 = vector.shape_cast %79 : vector<1x1x8x128xf32> to vector<8x128xf32>
    %c13 = arith.constant 13 : index
    %c0_95 = arith.constant 0 : index
    %c0_96 = arith.constant 0 : index
    %81 = vector.load %arg2[%c13, %c0_95, %c0_96] : memref<16x8x8xf32, #tpu.memory_space<vmem>>, vector<1x8x8xf32>
    %82 = vector.shape_cast %81 : vector<1x8x8xf32> to vector<8x8xf32>
    %cst_97 = arith.constant dense<0.000000e+00> : vector<8x128xf32>
    %83 = tpu.matmul %82, %80, %cst_97 {dimension_numbers = #tpu.dot_dimension_numbers<[1], [0], [0], [1], [0, 0, 1, 1], [], []>} : vector<8x8xf32>, vector<8x128xf32>, vector<8x128xf32> -> vector<8x128xf32>
    %84 = arith.addf %78, %83 : vector<8x128xf32>
    %c0_98 = arith.constant 0 : index
    %c2_99 = arith.constant 2 : index
    %c0_100 = arith.constant 0 : index
    %c10_101 = arith.constant 10 : index
    %85 = vector.load %arg1[%c0_98, %c2_99, %c0_100, %c10_101] : memref<1x4x8x256xf32, #tpu.memory_space<vmem>>, vector<1x1x8x128xf32>
    %86 = vector.shape_cast %85 : vector<1x1x8x128xf32> to vector<8x128xf32>
    %c14 = arith.constant 14 : index
    %c0_102 = arith.constant 0 : index
    %c0_103 = arith.constant 0 : index
    %87 = vector.load %arg2[%c14, %c0_102, %c0_103] : memref<16x8x8xf32, #tpu.memory_space<vmem>>, vector<1x8x8xf32>
    %88 = vector.shape_cast %87 : vector<1x8x8xf32> to vector<8x8xf32>
    %cst_104 = arith.constant dense<0.000000e+00> : vector<8x128xf32>
    %89 = tpu.matmul %88, %86, %cst_104 {dimension_numbers = #tpu.dot_dimension_numbers<[1], [0], [0], [1], [0, 0, 1, 1], [], []>} : vector<8x8xf32>, vector<8x128xf32>, vector<8x128xf32> -> vector<8x128xf32>
    %90 = arith.addf %84, %89 : vector<8x128xf32>
    %c0_105 = arith.constant 0 : index
    %c3_106 = arith.constant 3 : index
    %c0_107 = arith.constant 0 : index
    %c10_108 = arith.constant 10 : index
    %91 = vector.load %arg1[%c0_105, %c3_106, %c0_107, %c10_108] : memref<1x4x8x256xf32, #tpu.memory_space<vmem>>, vector<1x1x8x128xf32>
    %92 = vector.shape_cast %91 : vector<1x1x8x128xf32> to vector<8x128xf32>
    %c15 = arith.constant 15 : index
    %c0_109 = arith.constant 0 : index
    %c0_110 = arith.constant 0 : index
    %93 = vector.load %arg2[%c15, %c0_109, %c0_110] : memref<16x8x8xf32, #tpu.memory_space<vmem>>, vector<1x8x8xf32>
    %94 = vector.shape_cast %93 : vector<1x8x8xf32> to vector<8x8xf32>
    %cst_111 = arith.constant dense<0.000000e+00> : vector<8x128xf32>
    %95 = tpu.matmul %94, %92, %cst_111 {dimension_numbers = #tpu.dot_dimension_numbers<[1], [0], [0], [1], [0, 0, 1, 1], [], []>} : vector<8x8xf32>, vector<8x128xf32>, vector<8x128xf32> -> vector<8x128xf32>
    %96 = arith.addf %90, %95 : vector<8x128xf32>
    %c0_112 = arith.constant 0 : index
    %c0_113 = arith.constant 0 : index
    %97 = vector.load %arg3[%c0_112, %c0_113] : memref<1x128xf32, #tpu.memory_space<vmem>>, vector<1x128xf32>
    %98 = vector.broadcast %97 : vector<1x128xf32> to vector<8x128xf32>
    %99 = arith.mulf %96, %98 : vector<8x128xf32>
    %cst_114 = arith.constant dense<0.000000e+00> : vector<8xf32>
    %100 = vector.multi_reduction <add>, %99, %cst_114 [1] : vector<8x128xf32> to vector<8xf32>
    %101 = vector.shape_cast %100 : vector<8xf32> to vector<8x1xf32>
    %102 = arith.mulf %99, %99 : vector<8x128xf32>
    %cst_115 = arith.constant dense<0.000000e+00> : vector<8xf32>
    %103 = vector.multi_reduction <add>, %102, %cst_115 [1] : vector<8x128xf32> to vector<8xf32>
    %104 = vector.shape_cast %103 : vector<8xf32> to vector<8x1xf32>
    %cst_116 = arith.constant 1.562500e-02 : f32
    %105 = vector.broadcast %cst_116 : f32 to vector<8x1xf32>
    %106 = arith.mulf %101, %105 : vector<8x1xf32>
    %cst_117 = arith.constant 1.562500e-02 : f32
    %107 = vector.broadcast %cst_117 : f32 to vector<8x1xf32>
    %108 = arith.mulf %104, %107 : vector<8x1xf32>
    %109 = arith.mulf %106, %106 : vector<8x1xf32>
    %110 = arith.subf %108, %109 : vector<8x1xf32>
    %cst_118 = arith.constant 0.000000e+00 : f32
    %111 = vector.broadcast %cst_118 : f32 to vector<8x1xf32>
    %112 = arith.maximumf %110, %111 : vector<8x1xf32>
    %cst_119 = arith.constant 9.99999974E-6 : f32
    %113 = vector.broadcast %cst_119 : f32 to vector<8x1xf32>
    %114 = arith.addf %112, %113 : vector<8x1xf32>
    %115 = math.rsqrt %114 : vector<8x1xf32>
    %116 = vector.broadcast %106 : vector<8x1xf32> to vector<8x128xf32>
    %117 = arith.subf %96, %116 : vector<8x128xf32>
    %118 = vector.broadcast %115 : vector<8x1xf32> to vector<8x128xf32>
    %119 = arith.mulf %117, %118 : vector<8x128xf32>
    %cst_120 = arith.constant 0.000000e+00 : f32
    %120 = vector.broadcast %cst_120 : f32 to vector<8x128xf32>
    %121 = arith.cmpf oge, %119, %120 : vector<8x128xf32>
    %cst_121 = arith.constant 2.000000e-01 : f32
    %122 = vector.broadcast %cst_121 : f32 to vector<8x128xf32>
    %123 = arith.mulf %122, %119 : vector<8x128xf32>
    %124 = arith.select %121, %119, %123 : vector<8x128xi1>, vector<8x128xf32>
    %c0_122 = arith.constant 0 : index
    %c0_123 = arith.constant 0 : index
    %c0_124 = arith.constant 0 : index
    %125 = vector.load %arg4[%c0_122, %c0_123, %c0_124] : memref<1x8x128xf32, #tpu.memory_space<vmem>>, vector<1x8x128xf32>
    %126 = vector.shape_cast %125 : vector<1x8x128xf32> to vector<8x128xf32>
    %127 = vector.shape_cast %124 : vector<8x128xf32> to vector<1x8x128xf32>
    tpu.vector_store %arg4[%c0_122, %c0_123, %c0_124], %127 {strides = array<i32>} : memref<1x8x128xf32, #tpu.memory_space<vmem>>, vector<1x8x128xf32>,
    return
  }
  func.func @transform_0(%arg0: i32) -> (i32, i32, i32, i32) {
    %c0_i32 = arith.constant 0 : i32
    %c0_i32_0 = arith.constant 0 : i32
    %c0_i32_1 = arith.constant 0 : i32
    %c0_i32_2 = arith.constant 0 : i32
    return %arg0, %c0_i32, %c0_i32_0, %c0_i32_1 : i32, i32, i32, i32
  }
  func.func @transform_1(%arg0: i32) -> (i32, i32, i32) {
    %c0_i32 = arith.constant 0 : i32
    %c0_i32_0 = arith.constant 0 : i32
    %c0_i32_1 = arith.constant 0 : i32
    %c0_i32_2 = arith.constant 0 : i32
    return %c0_i32, %c0_i32_0, %c0_i32_1 : i32, i32, i32
  }
  func.func @transform_2(%arg0: i32) -> (i32, i32) {
    %c0_i32 = arith.constant 0 : i32
    %c0_i32_0 = arith.constant 0 : i32
    %c0_i32_1 = arith.constant 0 : i32
    return %c0_i32, %c0_i32_0 : i32, i32
  }
  func.func @transform_3(%arg0: i32) -> (i32, i32, i32) {
    %c0_i32 = arith.constant 0 : i32
    %c0_i32_0 = arith.constant 0 : i32
    %c0_i32_1 = arith.constant 0 : i32
    return %arg0, %c0_i32, %c0_i32_0 : i32, i32, i32
  }
}

</mosaic_0001>

<bundles_post_ra>
// kernel: unet_down.1
= control target key start
LH: loop header
LB: loop body
LE: loop exit
PB: predicated region body
PF: predicated region fallthrough
CT: control target
= control target key end

     0   :  { %s1772_s12 = smov 0   ;;  %s1920_s0 = inlined_call_operand.vmem [shape: f32[2,4,8,256], index: 0, kind: input, shape index: {}]   ;;  %s1921_s1 = inlined_call_operand.vmem [shape: f32[16,8,8], index: 1, kind: input, shape index: {}]   ;;  %s1922_s2 = inlined_call_operand.vmem [shape: f32[1,128], index: 2, kind: input, shape index: {}]   ;;  %s1923_s3 = inlined_call_operand.vmem [shape: f32[2,8,128], index: 3, kind: output, shape index: {}]  }
   0x1 LB: > { %s1560_s13 = sadd.s32 4294967295, %s1745_s12   ;;  %p1564_p0 = scmp.ge.s32.totalorder %s1745_s12, 1  ;;  %s1745_s12 = sphi %s1772_s12, %s13_s12  }
   0x2   : > { %p137_p1 = scmp.lt.s32.totalorder %s1745_s12, 3 }
   0x4   : > { %p138_p2 = pnand %p1564_p0, %p137_p1 }
   0x5   : > { %p160_p3 = scmp.lt.s32.totalorder (!%p138_p2), %s1560_s13, 1  ;;  %s1749_s20 = smov (!%p138_p2), 127  }
   0x6   : > { %141 = sbr.rel (%p138_p2) target bundleno = 541 (0x21d), region = 32  ;;  %s1750_s23 = smov (!%p138_p2), 119  }
   0x7   : > { %s1751_s24 = smov (!%p138_p2), 118  }
   0xb   : > { %v1747_v0 = vmov 0.0   ;;  %vm1748_vm0 = vmmov 0   ;;  %s1925_s13 = smov (!%p160_p3, %s1560_s13), 1  ;;  %v1569_v3 = vld [vmem:[%s1921_s1 + $0x8] sm:$0xff]  ;;  %vm175_vm1 = vcmask 64512   ;;  %v170_v4 = vld [vmem:[%s1921_s1] sm:$0xff] }
   0xc   : > { %1644 = vmatprep.subr.mxu0 %v1747_v0  ;;  %1646 = vmatprep.mubr.msk.f32.mxu0 %vm1748_vm0, %v1747_v0  ;;  %s1611_s14 = sshll.u32 %s1925_s13, 6  ;;  %vm332_vm2 = vcmask 1039360   ;;  %v1572_v15 = vld [vmem:[%s1921_s1 + $0x10] sm:$0xff]  ;;  %v1576_v18 = vld [vmem:[%s1921_s1 + $0x18] sm:$0xff]  ;;  %v1579_v21 = vld [vmem:[%s1921_s1 + $0x20] sm:$0xff]  ;;  %vm829_vm3 = vcmask 973824  }
   0xd   : > { %1649 = vmatprep.subr.mxu1 %v1747_v0  ;;  %1651 = vmatprep.mubr.msk.f32.mxu1 %vm1748_vm0, %v1747_v0  ;;  %s164_s17 = scalar_lea.vmem %s1920_s0, %s1611_s14  ;;  %v1582_v23 = vld [vmem:[%s1921_s1 + $0x28] sm:$0xff]  ;;  %v1586_v26 = vld [vmem:[%s1921_s1 + $0x30] sm:$0xff]  ;;  %v1590_v28 = vld [vmem:[%s1921_s1 + $0x38] sm:$0xff]  ;;  %vm994_vm4 = vcmask 965632   ;;  %s1567_s30 = sshll.u32 %s1925_s13, 3 }
   0xe   : > { %v1574_v1 = vld [vmem:[%s164_s17 + $0x10] sm:$0xff]  ;;  %v322_v2 = vld [vmem:[%s164_s17] sm:$0xff]  ;;  %v1575_v5 = vld [vmem:[%s164_s17 + $0x18] sm:$0xff]  ;;  %s168_s6 = scalar_lea.vmem %s1923_s3, %s1567_s30 }
   0xf   : > { %415 = vrot.lane.b32.xlu1 %v1574_v1, %s1749_s20  ;;  %328 = vrot.lane.b32.xlu0 %v322_v2, %s1749_s20  ;;  %v323_v6 = vld [vmem:[%s164_s17 + $0x8] sm:$0xff]  ;;  %v1584_v8 = vld [vmem:[%s164_s17 + $0x20] sm:$0xff] }
  0x10   : > { %1645 = vmatpush3.msra.mxu0 %v1574_v1  ;;  %1650 = vmatpush3.msra.mxu1 %v322_v2  ;;  %v1585_v7 = vld [vmem:[%s164_s17 + $0x28] sm:$0xff]  ;;  %v1589_v9 = vld [vmem:[%s164_s17 + $0x38] sm:$0xff]  ;;  %v1588_v10 = vld [vmem:[%s164_s17 + $0x30] sm:$0xff] }
  0x11   : > { %1647 = vmatmul.mubr.msk.f32.vlgmr.msra.gmra.mxu0 %vm175_vm1, %v1569_v3  ;;  %1654 = vmatprep.subr.mxu0 %v1747_v0  ;;  %v1592_v31 = vld [vmem:[%s1921_s1 + $0x40] sm:$0xff]  ;;  %v1594_v35 = vld [vmem:[%s1921_s1 + $0x48] sm:$0xff]  ;;  %v1596_v39 = vld [vmem:[%s1921_s1 + $0x50] sm:$0xff] }
  0x12   : > { %1659 = vmatprep.subr.mxu1 %v1747_v0  ;;  %1652 = vmatmul.mubr.msk.f32.vlgmr.msra.gmra.mxu1 %vm175_vm1, %v170_v4  ;;  %v1598_v43 = vld [vmem:[%s1921_s1 + $0x58] sm:$0xff]  ;;  %v1600_v47 = vld [vmem:[%s1921_s1 + $0x60] sm:$0xff]  ;;  %v1602_v51 = vld [vmem:[%s1921_s1 + $0x68] sm:$0xff] }
  0x13   : > { %417 = vrot.lane.b32.xlu1 %v1575_v5, %s1749_s20  ;;  %330 = vrot.lane.b32.xlu0 %v323_v6, %s1749_s20  ;;  %v1604_v55 = vld [vmem:[%s1921_s1 + $0x70] sm:$0xff]  ;;  %v1606_v59 = vld [vmem:[%s1921_s1 + $0x78] sm:$0xff] }
  0x14   : > { %1656 = vmatprep.mubr.msk.f32.mxu0 %vm1748_vm0, %v1747_v0  ;;  %1661 = vmatprep.mubr.msk.f32.mxu1 %vm1748_vm0, %v1747_v0 }
  0x17   : > { %659 = vrot.lane.b32.xlu1 %v1585_v7, %s1749_s20  ;;  %657 = vrot.lane.b32.xlu0 %v1584_v8, %s1749_s20 }
  0x1b   : > { %745 = vrot.lane.b32.xlu1 %v1589_v9, %s1749_s20  ;;  %743 = vrot.lane.b32.xlu0 %v1588_v10, %s1749_s20 }
  0x1f   : > { %827 = vrot.lane.b32.xlu1 %v323_v6, %s1750_s23  ;;  %825 = vrot.lane.b32.xlu0 %v322_v2, %s1750_s23 }
  0x23   : > { %910 = vrot.lane.b32.xlu1 %v1575_v5, %s1750_s23  ;;  %908 = vrot.lane.b32.xlu0 %v1574_v1, %s1750_s23 }
  0x27   : > { %992 = vrot.lane.b32.xlu1 %v323_v6, %s1751_s24  ;;  %990 = vrot.lane.b32.xlu0 %v322_v2, %s1751_s24 }
  0x2b   : > { %1075 = vrot.lane.b32.xlu1 %v1575_v5, %s1751_s24  ;;  %1073 = vrot.lane.b32.xlu0 %v1574_v1, %s1751_s24 }
  0x2f   : > { %1157 = vrot.lane.b32.xlu1 %v1585_v7, %s1750_s23  ;;  %1155 = vrot.lane.b32.xlu0 %v1584_v8, %s1750_s23 }
  0x33   : > { %1239 = vrot.lane.b32.xlu1 %v1589_v9, %s1750_s23  ;;  %1237 = vrot.lane.b32.xlu0 %v1588_v10, %s1750_s23 }
  0x37   : > { %1321 = vrot.lane.b32.xlu1 %v1585_v7, %s1751_s24  ;;  %1319 = vrot.lane.b32.xlu0 %v1584_v8, %s1751_s24 }
  0x3b   : > { %1403 = vrot.lane.b32.xlu1 %v1589_v9, %s1751_s24  ;;  %1401 = vrot.lane.b32.xlu0 %v1588_v10, %s1751_s24 }
  0x81   : > { %v416_v11 = vpop.permute.xlu1 %415  ;;  %v329_v12 = vpop.permute.xlu0 %328 }
  0x85   : > { %v418_v13 = vpop.permute.xlu1 %417  ;;  %v331_v14 = vpop.permute.xlu0 %330 }
  0x86   : > { %v419_v16 = vsel %vm332_vm2, %v416_v11, %v418_v13  ;;  %v333_v17 = vsel %vm332_vm2, %v329_v12, %v331_v14 }
  0x87   : > { %1655 = vmatpush3.msra.mxu0 %v333_v17  ;;  %1660 = vmatpush3.msra.mxu1 %v419_v16 }
  0x88   : > { %1657 = vmatmul.mubr.msk.f32.vlgmr.msra.gmra.mxu0 %vm175_vm1, %v1572_v15  ;;  %1664 = vmatprep.subr.mxu0 %v1747_v0 }
  0x89   : > { %v660_v19 = vpop.permute.xlu1 %659  ;;  %v658_v20 = vpop.permute.xlu0 %657  ;;  %1665 = vmatpush3.msra.mxu0 %v1584_v8  ;;  %1662 = vmatmul.mubr.msk.f32.vlgmr.msra.gmra.mxu1 %vm175_vm1, %v1576_v18 }
  0x8a   : > { %v661_v22 = vsel %vm332_vm2, %v658_v20, %v660_v19  ;;  %1666 = vmatprep.mubr.msk.f32.mxu0 %vm1748_vm0, %v1747_v0  ;;  %1674 = vmatprep.subr.mxu0 %v1747_v0 }
  0x8b   : > { %1669 = vmatprep.subr.mxu1 %v1747_v0  ;;  %1671 = vmatprep.mubr.msk.f32.mxu1 %vm1748_vm0, %v1747_v0 }
  0x8c   : > { %1667 = vmatmul.mubr.msk.f32.vlgmr.msra.gmra.mxu0 %vm175_vm1, %v1579_v21  ;;  %1670 = vmatpush3.msra.mxu1 %v1588_v10 }
  0x8d   : > { %1675 = vmatpush3.msra.mxu0 %v661_v22  ;;  %v746_v24 = vpop.permute.xlu1 %745  ;;  %v744_v25 = vpop.permute.xlu0 %743  ;;  %1679 = vmatprep.subr.mxu1 %v1747_v0 }
  0x8e   : > { %v747_v27 = vsel %vm332_vm2, %v744_v25, %v746_v24  ;;  %1672 = vmatmul.mubr.msk.f32.vlgmr.msra.gmra.mxu1 %vm175_vm1, %v1582_v23  ;;  %1676 = vmatprep.mubr.msk.f32.mxu0 %vm1748_vm0, %v1747_v0 }
  0x8f   : > { %1680 = vmatpush3.msra.mxu1 %v747_v27  ;;  %1684 = vmatprep.subr.mxu0 %v1747_v0 }
  0x90   : > { %1677 = vmatmul.mubr.msk.f32.vlgmr.msra.gmra.mxu0 %vm175_vm1, %v1586_v26  ;;  %1681 = vmatprep.mubr.msk.f32.mxu1 %vm1748_vm0, %v1747_v0 }
  0x91   : > { %v828_v29 = vpop.permute.xlu1 %827  ;;  %v826_v30 = vpop.permute.xlu0 %825  ;;  %1689 = vmatprep.subr.mxu1 %v1747_v0  ;;  %1686 = vmatprep.mubr.msk.f32.mxu0 %vm1748_vm0, %v1747_v0 }
  0x92   : > { %v830_v32 = vsel %vm829_vm3, %v826_v30, %v828_v29  ;;  %1682 = vmatmul.mubr.msk.f32.vlgmr.msra.gmra.mxu1 %vm175_vm1, %v1590_v28 }
  0x93   : > { %1685 = vmatpush3.msra.mxu0 %v830_v32  ;;  %1691 = vmatprep.mubr.msk.f32.mxu1 %vm1748_vm0, %v1747_v0 }
  0x94   : > { %1694 = vmatprep.subr.mxu0 %v1747_v0  ;;  %1687 = vmatmul.mubr.msk.f32.vlgmr.msra.gmra.mxu0 %vm175_vm1, %v1592_v31 }
  0x95   : > { %v911_v33 = vpop.permute.xlu1 %910  ;;  %v909_v34 = vpop.permute.xlu0 %908  ;;  %1696 = vmatprep.mubr.msk.f32.mxu0 %vm1748_vm0, %v1747_v0 }
  0x96   : > { %v912_v36 = vsel %vm829_vm3, %v909_v34, %v911_v33 }
  0x97   : > { %1690 = vmatpush3.msra.mxu1 %v912_v36 }
  0x98   : > { %1699 = vmatprep.subr.mxu1 %v1747_v0  ;;  %1692 = vmatmul.mubr.msk.f32.vlgmr.msra.gmra.mxu1 %vm175_vm1, %v1594_v35 }
  0x99   : > { %v993_v37 = vpop.permute.xlu1 %992  ;;  %v991_v38 = vpop.permute.xlu0 %990  ;;  %1701 = vmatprep.mubr.msk.f32.mxu1 %vm1748_vm0, %v1747_v0 }
  0x9a   : > { %v995_v40 = vsel %vm994_vm4, %v991_v38, %v993_v37 }
  0x9b   : > { %1695 = vmatpush3.msra.mxu0 %v995_v40 }
  0x9c   : > { %1704 = vmatprep.subr.mxu0 %v1747_v0  ;;  %1697 = vmatmul.mubr.msk.f32.vlgmr.msra.gmra.mxu0 %vm175_vm1, %v1596_v39 }
  0x9d   : > { %v1076_v41 = vpop.permute.xlu1 %1075  ;;  %v1074_v42 = vpop.permute.xlu0 %1073  ;;  %1706 = vmatprep.mubr.msk.f32.mxu0 %vm1748_vm0, %v1747_v0 }
  0x9e   : > { %v1077_v44 = vsel %vm994_vm4, %v1074_v42, %v1076_v41  ;;  %v1608_v42 = vld [vmem:[%s1922_s2] ss:$0 sm:$0xff] }
  0x9f   : > { %1700 = vmatpush3.msra.mxu1 %v1077_v44 }
  0xa0   : > { %1709 = vmatprep.subr.mxu1 %v1747_v0  ;;  %1702 = vmatmul.mubr.msk.f32.vlgmr.msra.gmra.mxu1 %vm175_vm1, %v1598_v43 }
  0xa1   : > { %v1158_v45 = vpop.permute.xlu1 %1157  ;;  %v1156_v46 = vpop.permute.xlu0 %1155  ;;  %1711 = vmatprep.mubr.msk.f32.mxu1 %vm1748_vm0, %v1747_v0 }
  0xa2   : > { %v1159_v48 = vsel %vm829_vm3, %v1156_v46, %v1158_v45 }
  0xa3   : > { %1705 = vmatpush3.msra.mxu0 %v1159_v48 }
  0xa4   : > { %1707 = vmatmul.mubr.msk.f32.vlgmr.msra.gmra.mxu0 %vm175_vm1, %v1600_v47  ;;  %1714 = vmatprep.subr.mxu0 %v1747_v0 }
  0xa5   : > { %v1240_v49 = vpop.permute.xlu1 %1239  ;;  %v1238_v50 = vpop.permute.xlu0 %1237  ;;  %1716 = vmatprep.mubr.msk.f32.mxu0 %vm1748_vm0, %v1747_v0 }
  0xa6   : > { %v1241_v52 = vsel %vm829_vm3, %v1238_v50, %v1240_v49 }
  0xa7   : > { %1710 = vmatpush3.msra.mxu1 %v1241_v52 }
  0xa8   : > { %1712 = vmatmul.mubr.msk.f32.vlgmr.msra.gmra.mxu1 %vm175_vm1, %v1602_v51  ;;  %1719 = vmatprep.subr.mxu1 %v1747_v0 }
  0xa9   : > { %v1322_v53 = vpop.permute.xlu1 %1321  ;;  %v1320_v54 = vpop.permute.xlu0 %1319  ;;  %1721 = vmatprep.mubr.msk.f32.mxu1 %vm1748_vm0, %v1747_v0 }
  0xaa   : > { %v1323_v56 = vsel %vm994_vm4, %v1320_v54, %v1322_v53 }
  0xab   : > { %1715 = vmatpush3.msra.mxu0 %v1323_v56 }
  0xac   : > { %1717 = vmatmul.mubr.msk.f32.vlgmr.msra.gmra.mxu0 %vm175_vm1, %v1604_v55 }
  0xad   : > { %v1404_v57 = vpop.permute.xlu1 %1403  ;;  %v1402_v58 = vpop.permute.xlu0 %1401 }
  0xae   : > { %v1405_v60 = vsel %vm994_vm4, %v1402_v58, %v1404_v57 }
  0xaf   : > { %1720 = vmatpush3.msra.mxu1 %v1405_v60 }
  0xb0   : > { %1722 = vmatmul.mubr.msk.f32.vlgmr.msra.gmra.mxu1 %vm175_vm1, %v1606_v59 }
  0xd1   : > { %v245_v61 = vpop.f32.mrf.mxu0 }
  0xd2   : > { %v318_v62 = vpop.f32.mrf.mxu1 }
  0xd3   : > { %v1648_v63 = vpop.f32.mrf.mxu0  ;;  %v319_v0 = vadd.f32 %v318_v62, %v245_v61 }
  0xd4   : > { %v1653_v1 = vpop.f32.mrf.mxu1 }
 0x148   : > { %v404_v2 = vpop.f32.mrf.mxu0 }
 0x149   : > { %v408_v3 = vadd.f32 %v404_v2, %v319_v0  ;;  %v490_v4 = vpop.f32.mrf.mxu1 }
 0x14a   : > { %v1658_v5 = vpop.f32.mrf.mxu0 }
 0x14b   : > { %v494_v6 = vadd.f32 %v490_v4, %v408_v3  ;;  %v1663_v7 = vpop.f32.mrf.mxu1 }
 0x14c   : > { %v568_v8 = vpop.f32.mrf.mxu0 }
 0x14d   : > { %v572_v9 = vadd.f32 %v568_v8, %v494_v6 }
 0x14e   : > { %v1668_v10 = vpop.f32.mrf.mxu0  ;;  %v646_v11 = vpop.f32.mrf.mxu1 }
 0x14f   : > { %v650_v12 = vadd.f32 %v646_v11, %v572_v9 }
 0x150   : > { %v1673_v13 = vpop.f32.mrf.mxu1  ;;  %v732_v14 = vpop.f32.mrf.mxu0 }
 0x151   : > { %v736_v15 = vadd.f32 %v732_v14, %v650_v12 }
 0x152   : > { %v1678_v16 = vpop.f32.mrf.mxu0  ;;  %v818_v17 = vpop.f32.mrf.mxu1 }
 0x153   : > { %v822_v18 = vadd.f32 %v818_v17, %v736_v15 }
 0x154   : > { %v1683_v19 = vpop.f32.mrf.mxu1  ;;  %v901_v20 = vpop.f32.mrf.mxu0 }
 0x155   : > { %v905_v22 = vadd.f32 %v901_v20, %v822_v18 }
 0x156   : > { %v1688_v21 = vpop.f32.mrf.mxu0 }
 0x158   : > { %v983_v23 = vpop.f32.mrf.mxu1 }
 0x159   : > { %v987_v25 = vadd.f32 %v983_v23, %v905_v22 }
 0x15a   : > { %v1693_v24 = vpop.f32.mrf.mxu1 }
 0x15c   : > { %v1066_v26 = vpop.f32.mrf.mxu0 }
 0x15d   : > { %v1070_v28 = vadd.f32 %v1066_v26, %v987_v25 }
 0x15e   : > { %v1698_v27 = vpop.f32.mrf.mxu0 }
 0x160   : > { %v1148_v29 = vpop.f32.mrf.mxu1 }
 0x161   : > { %v1152_v31 = vadd.f32 %v1148_v29, %v1070_v28 }
 0x162   : > { %v1703_v30 = vpop.f32.mrf.mxu1 }
 0x164   : > { %v1230_v32 = vpop.f32.mrf.mxu0 }
 0x165   : > { %v1234_v34 = vadd.f32 %v1230_v32, %v1152_v31 }
 0x166   : > { %v1708_v33 = vpop.f32.mrf.mxu0 }
 0x168   : > { %v1312_v35 = vpop.f32.mrf.mxu1 }
 0x169   : > { %v1316_v37 = vadd.f32 %v1312_v35, %v1234_v34 }
 0x16a   : > { %v1713_v36 = vpop.f32.mrf.mxu1 }
 0x16c   : > { %v1394_v38 = vpop.f32.mrf.mxu0 }
 0x16d   : > { %v1398_v40 = vadd.f32 %v1394_v38, %v1316_v37 }
 0x16e   : > { %v1718_v39 = vpop.f32.mrf.mxu0 }
 0x170   : > { %v1476_v41 = vpop.f32.mrf.mxu1 }
 0x171   : > { %v1480_v43 = vadd.f32 %v1476_v41, %v1398_v40 }
 0x172   : > { %v1723_v44 = vpop.f32.mrf.mxu1 }
 0x173   : > { %v1488_v45 = vmul.f32 %v1608_v42, %v1480_v43 }
 0x175   : > { %1489 = vadd.xlane.f32.xlu0 %v1488_v45  ;;  %v1491_v46 = vmul.f32 %v1488_v45, %v1488_v45 }
 0x177   : > { %1492 = vadd.xlane.f32.xlu1 %v1491_v46 }
 0x1fe   : > { %v1490_v47 = vpop.xlane.xlu0 %1489 }
 0x1ff   : > { %v1494_v48 = vmul.f32 0.015625, %v1490_v47 }
 0x200   : > { %v1493_v49 = vpop.xlane.xlu1 %1492 }
 0x201   : > { %v1496_v50 = vmul.f32 %v1494_v48, %v1494_v48  ;;  %v1495_v51 = vmul.f32 0.015625, %v1493_v49  ;;  %v1501_v55 = vsub.f32 %v1480_v43, %v1494_v48 }
 0x203   : > { %v1497_v52 = vsub.f32 %v1495_v51, %v1496_v50 }
 0x205   : > { %v1498_v53 = vmax.f32 %v1497_v52, 0.0 }
 0x207   : > { %v1499_v54 = vadd.f32 1e-05, %v1498_v53 }
 0x209   : > { %1737 = vrsqrt.f32 %v1499_v54 }
 0x216   : > { %v1738_v56 = vpop.eup %1737 }
 0x217   : > { %v1502_v57 = vmul.f32 %v1738_v56, %v1501_v55 }
 0x219   : > { %vm1503_vm5 = vcmp.ge.f32.partialorder %v1502_v57, 0.0  ;;  %v1504_v58 = vmul.f32 0.2, %v1502_v57 }
 0x21b   : > { %v1505_v59 = vsel %vm1503_vm5, %v1502_v57, %v1504_v58 }
 0x21c   : > { %1506 = vst [vmem:[%s168_s6] sm:$0xff] %v1505_v59 }
 0x21d PF: > { %s13_s12 = sadd.s32 1, %s1745_s12  }
 0x21e   : > { %p10_p4 = scmp.ge.s32.totalorder %s13_s12, 4  }
 0x220   :  { %12 = sbr.rel (!%p10_p4) target bundleno = 1 (0x1), region = 80 }

</bundles_post_ra>
